<compile_context>
chip_gen: v6e
topology: v6e:2x2x1
jax: 0.10.0
libtpu: 0.0.40
codegen_flags: <defaults>
</compile_context>

<pallas_src>
import numpy as np
import jax
import jax.numpy as jnp
from jax import lax
from jax.experimental import pallas as pl
from jax.experimental.pallas import tpu as pltpu


# ----------------------------------------------------------------------------
# Fused  BN(eval) -> fc1 -> GELU -> fc2 -> gamma -> (+shortcut)  Pallas kernel
# Layout: channels on sublanes, pixels on lanes: blocks are (C, tile_pixels).
# ----------------------------------------------------------------------------

_SQRT_2_OVER_PI = 0.7978845608028654


def _gelu_tanh(x):
    # tanh-approximate GELU (EUP tanh; matches the pure-JAX reference below).
    return 0.5 * x * (1.0 + jnp.tanh(_SQRT_2_OVER_PI * (x + 0.044715 * x * x * x)))


def _rcm_mlp_kernel(t_ref, res_ref, w1_ref, b1_ref, w2_ref, b2_ref, o_ref):
    # t_ref:   (C_in,  tm)   token-mixer output tile (BN already folded into w1/b1)
    # res_ref: (C_out, tm)   residual / shortcut tile
    # w1_ref:  (C_hid, C_in) fc1 weight with BN scale folded in
    # b1_ref:  (C_hid, 1)    fc1 bias with BN shift folded in (f32)
    # w2_ref:  (C_out, C_hid) fc2 weight with layer-scale gamma folded in
    # b2_ref:  (C_out, 1)    fc2 bias * gamma (f32)
    # o_ref:   (C_out, tm)   lane-dense output tile
    h = jnp.dot(w1_ref[...], t_ref[...], preferred_element_type=jnp.float32)
    h = h + b1_ref[...]
    h = _gelu_tanh(h)
    y = jnp.dot(w2_ref[...], h.astype(w2_ref.dtype),
                preferred_element_type=jnp.float32)
    y = y + b2_ref[...]
    o_ref[...] = (y + res_ref[...].astype(jnp.float32)).astype(o_ref.dtype)


def _choose_hw_tile(hw, per_px_bytes, weight_bytes, *, budget=20 << 20,
                    max_tile=8192):
    """Pick the pixel (lane) tile. Returns (tile, padded_hw)."""
    avail = max(budget - weight_bytes, 4 << 20)
    tm = max_tile  # multiple of 128; stays one while halving down to 128
    while tm > 128 and tm * per_px_bytes > avail:
        tm //= 2
    if hw <= tm:
        return hw, hw                       # full row: block dim == array dim
    padded = ((hw + tm - 1) // tm) * tm     # ragged HW -> pad to tile multiple
    return tm, padded


def fused_norm_mlp_residual(t, shortcut, p, *, bn_eps=1e-5, compute_dtype=None,
                            max_tile=8192):
    """out = shortcut + gamma * fc2(GELU(fc1(BN_eval(t))))  (drop_path = Identity)."""
    N, C, H, W = t.shape
    hw = H * W
    c_hid, c_in = p["fc1_w"].shape
    c_out = p["fc2_w"].shape[0]
    assert c_in == C and c_out == C
    out_dtype = shortcut.dtype

    # bf16 only pays off on the HBM-bound path when channel counts are real
    # (>=128); at tiny C it would just cost accuracy.
    if compute_dtype is None:
        compute_dtype = jnp.bfloat16 if min(C, c_hid, c_out) >= 128 else out_dtype
    cdt_size = np.dtype(compute_dtype).itemsize

    # Fold eval-mode BatchNorm into fc1, and layer-scale gamma into fc2 (tiny,
    # trace-time arithmetic on the weights — zero kernel cost).
    s = p["norm_w"] / jnp.sqrt(p["norm_var"] + bn_eps)            # (C,)
    u = p["norm_b"] - p["norm_mean"] * s                          # (C,)
    w1f = p["fc1_w"] * s[None, :]                                 # (C_hid, C)
    b1f = p["fc1_b"] + p["fc1_w"] @ u                             # (C_hid,)
    w2f = p["fc2_w"] * p["gamma"][:, None]                        # (C, C_hid)
    b2f = p["fc2_b"] * p["gamma"]                                 # (C,)

    t3 = t.reshape(N, C, hw)
    r3 = shortcut.reshape(N, c_out, hw)

    # VMEM budget: streamed tiles are double-buffered by the pipeline; weights
    # are resident (constant index_map) but conservatively counted x2.
    weight_bytes = 2 * (w1f.size + w2f.size) * cdt_size + 2 * (b1f.size + b2f.size) * 4
    per_px = (2 * C * cdt_size                 # t tile (x2 buffers)
              + 2 * c_out * r3.dtype.itemsize  # shortcut tile (x2 buffers)
              + 2 * c_out * np.dtype(out_dtype).itemsize  # out tile (x2 buffers)
              + (c_hid + c_out) * 4)           # f32 intermediates (h, y)
    tm, hw_padded = _choose_hw_tile(hw, per_px, weight_bytes, max_tile=max_tile)
    if hw_padded != hw:
        pad = hw_padded - hw
        t3 = jnp.pad(t3, ((0, 0), (0, 0), (0, pad)))
        r3 = jnp.pad(r3, ((0, 0), (0, 0), (0, pad)))

    grid = (N, hw_padded // tm)

    out = pl.pallas_call(
        _rcm_mlp_kernel,
        out_shape=jax.ShapeDtypeStruct((N, c_out, hw_padded), out_dtype),
        grid_spec=pltpu.PrefetchScalarGridSpec(
            num_scalar_prefetch=0,
            grid=grid,
            in_specs=[
                pl.BlockSpec((None, C, tm), lambda n, j: (n, 0, j)),       # t
                pl.BlockSpec((None, c_out, tm), lambda n, j: (n, 0, j)),   # shortcut
                pl.BlockSpec((c_hid, C), lambda n, j: (0, 0)),             # w1 (resident)
                pl.BlockSpec((c_hid, 1), lambda n, j: (0, 0)),             # b1
                pl.BlockSpec((c_out, c_hid), lambda n, j: (0, 0)),         # w2 (resident)
                pl.BlockSpec((c_out, 1), lambda n, j: (0, 0)),             # b2
            ],
            out_specs=pl.BlockSpec((None, c_out, tm), lambda n, j: (n, 0, j)),
        ),
        compiler_params=pltpu.CompilerParams(
            dimension_semantics=("parallel", "parallel"),
            vmem_limit_bytes=32 * 1024 * 1024,
        ),
    )(
        t3.astype(compute_dtype),
        r3,
        w1f.astype(compute_dtype),
        b1f.reshape(c_hid, 1).astype(jnp.float32),
        w2f.astype(compute_dtype),
        b2f.reshape(c_out, 1).astype(jnp.float32),
    )

    if hw_padded != hw:
        out = out[:, :, :hw]
    return out.reshape(N, c_out, H, W)


# ----------------------------------------------------------------------------
# RCA token mixer (tiny depthwise / band convs) — plain JAX ops.
# ----------------------------------------------------------------------------

def _depthwise_conv2d(x, w, b, padding):
    # x: (N,C,H,W); w: (C,1,kh,kw); b: (C,)
    c = x.shape[1]
    y = lax.conv_general_dilated(
        x, w, window_strides=(1, 1),
        padding=((padding[0], padding[0]), (padding[1], padding[1])),
        dimension_numbers=("NCHW", "OIHW", "NCHW"),
        feature_group_count=c)
    return y + b[None, :, None, None]


def rca_forward(x, p, *, bn_eps=1e-5):
    # dwconv_hw: depthwise square conv (kernel 3, pad 1)
    loc = _depthwise_conv2d(x, p["dw_w"], p["dw_b"], (1, 1))
    # sge: adaptive pools over W and H, then depthwise 1x11 -> BN -> ReLU ->
    # depthwise 11x1 -> sigmoid   (ratio=1 => grouped convs are depthwise)
    x_h = jnp.mean(x, axis=3, keepdims=True)        # (N,C,H,1)
    x_w = jnp.mean(x, axis=2, keepdims=True)        # (N,C,1,W)
    xg = x_h + x_w                                  # (N,C,H,W)
    g = _depthwise_conv2d(xg, p["e1_w"], p["e1_b"], (0, 5))
    scale = p["ebn_w"] / jnp.sqrt(p["ebn_var"] + bn_eps)
    g = (g - p["ebn_mean"][None, :, None, None]) * scale[None, :, None, None] \
        + p["ebn_b"][None, :, None, None]
    g = jnp.maximum(g, 0.0)
    g = _depthwise_conv2d(g, p["e2_w"], p["e2_b"], (5, 0))
    att = jax.nn.sigmoid(g)
    return att * loc


# ----------------------------------------------------------------------------
# Full RCM forward (drop_path=0, mlp drop=0, mlp norm=Identity -> identity)
# ----------------------------------------------------------------------------

def rcm_forward(x, p, **kwargs):
    t = rca_forward(x, p)
    return fused_norm_mlp_residual(t, x, p, **kwargs)


def rcm_reference(x, p, *, bn_eps=1e-5):
    """Pure-JAX reference of the same forward pass."""
    t = rca_forward(x, p)
    s = p["norm_w"] / jnp.sqrt(p["norm_var"] + bn_eps)
    tn = (t - p["norm_mean"][None, :, None, None]) * s[None, :, None, None] \
        + p["norm_b"][None, :, None, None]
    h = jnp.einsum("nchw,dc->ndhw", tn, p["fc1_w"]) + p["fc1_b"][None, :, None, None]
    h = _gelu_tanh(h)
    y = jnp.einsum("ndhw,od->nohw", h, p["fc2_w"]) + p["fc2_b"][None, :, None, None]
    y = y * p["gamma"][None, :, None, None]
    return x + y


# ----------------------------------------------------------------------------
# Demo / correctness check
# ----------------------------------------------------------------------------

if __name__ == "__main__":
    N, dim, H, W = 2, 4, 16, 16
    mlp_ratio = 2
    hidden = int(mlp_ratio * dim)      # 8
    square_k, band_k = 3, 11           # RCM defaults: square_kernel_size=3, dw_size=11

    key = jax.random.PRNGKey(0)
    keys = jax.random.split(key, 21)

    def rnd(k, shape, scale=0.2):
        return scale * jax.random.normal(k, shape, dtype=jnp.float32)

    x = jax.random.normal(keys[0], (N, dim, H, W), dtype=jnp.float32)
    params = dict(
        # RCA.dwconv_hw (depthwise 3x3)
        dw_w=rnd(keys[1], (dim, 1, square_k, square_k), 0.3),
        dw_b=rnd(keys[2], (dim,), 0.1),
        # RCA.excite: depthwise (1,11) conv -> BN -> ReLU -> depthwise (11,1) conv -> sigmoid
        e1_w=rnd(keys[3], (dim, 1, 1, band_k), 0.3),
        e1_b=rnd(keys[4], (dim,), 0.1),
        ebn_w=1.0 + rnd(keys[5], (dim,), 0.1),
        ebn_b=rnd(keys[6], (dim,), 0.1),
        ebn_mean=rnd(keys[7], (dim,), 0.1),
        ebn_var=jax.random.uniform(keys[8], (dim,), minval=0.5, maxval=1.5),
        e2_w=rnd(keys[9], (dim, 1, band_k, 1), 0.3),
        e2_b=rnd(keys[10], (dim,), 0.1),
        # RCM.norm (BatchNorm2d, eval mode)
        norm_w=1.0 + rnd(keys[11], (dim,), 0.1),
        norm_b=rnd(keys[12], (dim,), 0.1),
        norm_mean=rnd(keys[13], (dim,), 0.1),
        norm_var=jax.random.uniform(keys[14], (dim,), minval=0.5, maxval=1.5),
        # RCM.mlp = ConvMlp(dim, 2*dim, act=GELU): 1x1 convs as matrices
        fc1_w=rnd(keys[15], (hidden, dim), 0.3),
        fc1_b=rnd(keys[16], (hidden,), 0.1),
        fc2_w=rnd(keys[17], (dim, hidden), 0.3),
        fc2_b=rnd(keys[18], (dim,), 0.1),
        # layer scale (non-trivial values so the MLP branch is actually tested)
        gamma=rnd(keys[19], (dim,), 0.2),
    )

    out = rcm_forward(x, params)
    out = jax.block_until_ready(out)

    ref = rcm_reference(x, params)
    assert out.shape == (N, dim, H, W)
    max_err = float(jnp.max(jnp.abs(out - ref)))
    assert jnp.allclose(out, ref, atol=1e-5, rtol=1e-5), f"max abs err = {max_err}"

    print("KERNEL_OK")
</pallas_src>

<mosaic_0001>
module attributes {stable_mosaic.version = 11 : i64} {
  func.func @_rcm_mlp_kernel(%arg0: i32, %arg1: i32, %arg2: memref<1x4x256xf32, #tpu.memory_space<vmem>>, %arg3: memref<1x4x256xf32, #tpu.memory_space<vmem>>, %arg4: memref<8x4xf32, #tpu.memory_space<vmem>>, %arg5: memref<8x1xf32, #tpu.memory_space<vmem>>, %arg6: memref<4x8xf32, #tpu.memory_space<vmem>>, %arg7: memref<4x1xf32, #tpu.memory_space<vmem>>, %arg8: memref<1x4x256xf32, #tpu.memory_space<vmem>>) attributes {dimension_semantics = [#tpu.dimension_semantics<parallel>, #tpu.dimension_semantics<parallel>], iteration_bounds = array<i64: 2, 1>, scalar_prefetch = 0 : i64, scratch_operands = 0 : i64, tpu.core_type = #tpu.core_type<tc>, window_params = [{transform_indices = @transform_0, window_bounds = array<i64: 1, 4, 256>}, {transform_indices = @transform_1, window_bounds = array<i64: 1, 4, 256>}, {pipeline_mode = #tpu.pipeline_mode<synchronous>, transform_indices = @transform_2, window_bounds = array<i64: 8, 4>}, {pipeline_mode = #tpu.pipeline_mode<synchronous>, transform_indices = @transform_3, window_bounds = array<i64: 8, 1>}, {pipeline_mode = #tpu.pipeline_mode<synchronous>, transform_indices = @transform_4, window_bounds = array<i64: 4, 8>}, {pipeline_mode = #tpu.pipeline_mode<synchronous>, transform_indices = @transform_5, window_bounds = array<i64: 4, 1>}, {transform_indices = @transform_6, window_bounds = array<i64: 1, 4, 256>}]} {
    %c0 = arith.constant 0 : index
    %c0_0 = arith.constant 0 : index
    %0 = vector.load %arg4[%c0, %c0_0] : memref<8x4xf32, #tpu.memory_space<vmem>>, vector<8x4xf32>
    %c0_1 = arith.constant 0 : index
    %c0_2 = arith.constant 0 : index
    %c0_3 = arith.constant 0 : index
    %1 = vector.load %arg2[%c0_1, %c0_2, %c0_3] : memref<1x4x256xf32, #tpu.memory_space<vmem>>, vector<1x4x256xf32>
    %2 = vector.shape_cast %1 : vector<1x4x256xf32> to vector<4x256xf32>
    %cst = arith.constant dense<0.000000e+00> : vector<8x256xf32>
    %3 = tpu.matmul %0, %2, %cst {dimension_numbers = #tpu.dot_dimension_numbers<[1], [0], [0], [1], [0, 0, 1, 1], [], []>} : vector<8x4xf32>, vector<4x256xf32>, vector<8x256xf32> -> vector<8x256xf32>
    %c0_4 = arith.constant 0 : index
    %c0_5 = arith.constant 0 : index
    %4 = vector.load %arg5[%c0_4, %c0_5] : memref<8x1xf32, #tpu.memory_space<vmem>>, vector<8x1xf32>
    %5 = vector.broadcast %4 : vector<8x1xf32> to vector<8x256xf32>
    %6 = arith.addf %3, %5 : vector<8x256xf32>
    %cst_6 = arith.constant 5.000000e-01 : f32
    %7 = vector.broadcast %cst_6 : f32 to vector<8x256xf32>
    %8 = arith.mulf %7, %6 : vector<8x256xf32>
    %cst_7 = arith.constant 4.471500e-02 : f32
    %9 = vector.broadcast %cst_7 : f32 to vector<8x256xf32>
    %10 = arith.mulf %9, %6 : vector<8x256xf32>
    %11 = arith.mulf %10, %6 : vector<8x256xf32>
    %12 = arith.mulf %11, %6 : vector<8x256xf32>
    %13 = arith.addf %6, %12 : vector<8x256xf32>
    %cst_8 = arith.constant 0.797884583 : f32
    %14 = vector.broadcast %cst_8 : f32 to vector<8x256xf32>
    %15 = arith.mulf %14, %13 : vector<8x256xf32>
    %16 = math.tanh %15 : vector<8x256xf32>
    %cst_9 = arith.constant 1.000000e+00 : f32
    %17 = vector.broadcast %cst_9 : f32 to vector<8x256xf32>
    %18 = arith.addf %17, %16 : vector<8x256xf32>
    %19 = arith.mulf %8, %18 : vector<8x256xf32>
    %c0_10 = arith.constant 0 : index
    %c0_11 = arith.constant 0 : index
    %20 = vector.load %arg6[%c0_10, %c0_11] : memref<4x8xf32, #tpu.memory_space<vmem>>, vector<4x8xf32>
    %cst_12 = arith.constant dense<0.000000e+00> : vector<4x256xf32>
    %21 = tpu.matmul %20, %19, %cst_12 {dimension_numbers = #tpu.dot_dimension_numbers<[1], [0], [0], [1], [0, 0, 1, 1], [], []>} : vector<4x8xf32>, vector<8x256xf32>, vector<4x256xf32> -> vector<4x256xf32>
    %c0_13 = arith.constant 0 : index
    %c0_14 = arith.constant 0 : index
    %22 = vector.load %arg7[%c0_13, %c0_14] : memref<4x1xf32, #tpu.memory_space<vmem>>, vector<4x1xf32>
    %23 = vector.broadcast %22 : vector<4x1xf32> to vector<4x256xf32>
    %24 = arith.addf %21, %23 : vector<4x256xf32>
    %c0_15 = arith.constant 0 : index
    %c0_16 = arith.constant 0 : index
    %c0_17 = arith.constant 0 : index
    %25 = vector.load %arg3[%c0_15, %c0_16, %c0_17] : memref<1x4x256xf32, #tpu.memory_space<vmem>>, vector<1x4x256xf32>
    %26 = vector.shape_cast %25 : vector<1x4x256xf32> to vector<4x256xf32>
    %27 = arith.addf %24, %26 : vector<4x256xf32>
    %c0_18 = arith.constant 0 : index
    %c0_19 = arith.constant 0 : index
    %c0_20 = arith.constant 0 : index
    %28 = vector.load %arg8[%c0_18, %c0_19, %c0_20] : memref<1x4x256xf32, #tpu.memory_space<vmem>>, vector<1x4x256xf32>
    %29 = vector.shape_cast %28 : vector<1x4x256xf32> to vector<4x256xf32>
    %30 = vector.shape_cast %27 : vector<4x256xf32> to vector<1x4x256xf32>
    tpu.vector_store %arg8[%c0_18, %c0_19, %c0_20], %30 {strides = array<i32>} : memref<1x4x256xf32, #tpu.memory_space<vmem>>, vector<1x4x256xf32>,
    return
  }
  func.func @transform_0(%arg0: i32, %arg1: i32) -> (i32, i32, i32) {
    %c0_i32 = arith.constant 0 : i32
    %c0_i32_0 = arith.constant 0 : i32
    return %arg0, %c0_i32, %arg1 : i32, i32, i32
  }
  func.func @transform_1(%arg0: i32, %arg1: i32) -> (i32, i32, i32) {
    %c0_i32 = arith.constant 0 : i32
    %c0_i32_0 = arith.constant 0 : i32
    return %arg0, %c0_i32, %arg1 : i32, i32, i32
  }
  func.func @transform_2(%arg0: i32, %arg1: i32) -> (i32, i32) {
    %c0_i32 = arith.constant 0 : i32
    %c0_i32_0 = arith.constant 0 : i32
    %c0_i32_1 = arith.constant 0 : i32
    return %c0_i32, %c0_i32_0 : i32, i32
  }
  func.func @transform_3(%arg0: i32, %arg1: i32) -> (i32, i32) {
    %c0_i32 = arith.constant 0 : i32
    %c0_i32_0 = arith.constant 0 : i32
    %c0_i32_1 = arith.constant 0 : i32
    return %c0_i32, %c0_i32_0 : i32, i32
  }
  func.func @transform_4(%arg0: i32, %arg1: i32) -> (i32, i32) {
    %c0_i32 = arith.constant 0 : i32
    %c0_i32_0 = arith.constant 0 : i32
    %c0_i32_1 = arith.constant 0 : i32
    return %c0_i32, %c0_i32_0 : i32, i32
  }
  func.func @transform_5(%arg0: i32, %arg1: i32) -> (i32, i32) {
    %c0_i32 = arith.constant 0 : i32
    %c0_i32_0 = arith.constant 0 : i32
    %c0_i32_1 = arith.constant 0 : i32
    return %c0_i32, %c0_i32_0 : i32, i32
  }
  func.func @transform_6(%arg0: i32, %arg1: i32) -> (i32, i32, i32) {
    %c0_i32 = arith.constant 0 : i32
    %c0_i32_0 = arith.constant 0 : i32
    return %arg0, %c0_i32, %arg1 : i32, i32, i32
  }
}

</mosaic_0001>

<bundles_post_ra>
// kernel: tpu_custom_call.1
= control target key start
LH: loop header
LB: loop body
LE: loop exit
PB: predicated region body
PF: predicated region fallthrough
CT: control target
= control target key end

     0   :  { %11 = vsyncpa [#allocation3], 0  ;;  %s1046_s0 = inlined_call_operand.vmem [shape: f32[2,4,256], index: 0, kind: input, shape index: {}]   ;;  %s1047_s1 = inlined_call_operand.hbm [shape: f32[2,4,256], index: 1, kind: input, shape index: {}]   ;;  %s1048_s2 = inlined_call_operand.vmem [shape: f32[8,4], index: 2, kind: input, shape index: {}]   ;;  %s1049_s3 = inlined_call_operand.vmem [shape: f32[8,1], index: 3, kind: input, shape index: {}]   ;;  %s1050_s4 = inlined_call_operand.vmem [shape: f32[4,8], index: 4, kind: input, shape index: {}]   ;;  %s1051_s5 = inlined_call_operand.vmem [shape: f32[4,1], index: 5, kind: input, shape index: {}]   ;;  %s1052_s6 = inlined_call_operand.hbm [shape: f32[2,4,256], index: 6, kind: output, shape index: {}]  }
   0x1   :  { %13 = vsyncpa [#allocation3 + $0x1], 0 }
   0x2   :  { %14 = vsyncpa [#allocation4], 0 }
   0x3   :  { %16 = vsyncpa [#allocation4 + $0x1], 0  ;;  %s888_s21 = smov 0   ;;  %s890_s22 = smov 0  }
   0x4   :  { %s892_s23 = smov 0   ;;  %s894_s24 = smov 0  }
   0x5   :  { %s896_s25 = smov 0   ;;  %s898_s26 = smov 0  }
   0x6 LB: > { %s644_s27 = sadd.s32 4294967295, %s847_s26   ;;  %s645_s28 = sadd.s32 4294967294, %s847_s26   ;;  %s847_s26 = sphi %s898_s26, %s22_s26   ;;  %s843_s25 = sphi %s896_s25, %s1064_s25   ;;  %s839_s24 = sphi %s894_s24, %s1063_s24   ;;  %s835_s23 = sphi %s892_s23, %s1062_s23   ;;  %s831_s22 = sphi %s890_s22, %s1061_s22   ;;  %s827_s21 = sphi %s888_s21, %s1060_s21  }
   0x7   : > { %s34_s29 = sadd.s32 1, %s843_s25  ;;  %s71_s30 = sadd.s32 1, %s835_s23 }
   0x8   : > { %p36_p0 = scmp.ge.s32.totalorder %s34_s29, 2  ;;  %p78_p1 = scmp.ne.s32.totalorder %s835_s23, %s831_s22 }
   0x9   : > { %p79_p2 = scmp.eq.s32.totalorder %s847_s26, 0  ;;  %p84_p3 = scmp.ne.s32.totalorder %s831_s22, %s827_s21 }
   0xa   : > { %s1066_s29 = smov (%p36_p0, %s34_s29), 0  ;;  %p85_p5 = scmp.eq.s32.totalorder %s644_s27, 0 }
   0xb   : > { %p929_p4 = por %p79_p2, %p78_p1  ;;  %s66_s8 = ssub.s32 %s843_s25, %s1066_s29 }
   0xc   : > { %p194_p6 = scmp.eq.s32.totalorder %s644_s27, 1  ;;  %p69_p7 = scmp.eq.s32.totalorder %s66_s8, 0 }
   0xd   : > { %p935_p8 = por %p85_p5, %p84_p3  ;;  %p200_p10 = scmp.eq.s32.totalorder %s645_s28, 1 }
   0xe   : > { %p939_p9 = por %p194_p6, %p78_p1  ;;  %p680_p13 = scmp.lt.s32.totalorder %s847_s26, 2 }
   0xf   : > { %s944_s11 = scalar_select %p69_p7, %s835_s23, %s71_s30  }
  0x10   : > { %p946_p11 = por %p200_p10, %p84_p3  ;;  %s245_s13 = sand.u32 1, %s835_s23  }
  0x11   : > { %s648_s14 = sshll.u32 %s245_s13, 3  ;;  %s665_s15 = sshll.u32 %s843_s25, 7 }
  0x12   : > { %s1056_s12 = scalar_select %p946_p11, 1, 0 }
  0x13   : > { %s257_s18 = scalar_lea.hbm %s1047_s1, %s665_s15  ;;  %s249_s19 = scalar_lea.vmem [#allocation2], %s648_s14 }
  0x14   : > { %s259_s20 = sshll.u32 %s249_s19, 4  ;;  %p959_p0 = pnand %p680_p13, %p929_p4  ;;  %s260_s20 = int_to_ptr.vmem [resolvable:$true] %s259_s20 }
  0x15   : > { %p651_p1 = scmp.ge.s32.totalorder %s847_s26, 1  ;;  %p264_p2 = scmp.lt.s32.totalorder %s847_s26, 3 }
  0x16   : > { %s246_s28 = scalar_lea.sflag [#allocation3], %s245_s13  ;;  %p741_p3 = pneg %p959_p0 }
  0x17   : > { %s752_s30 = scalar_lea.vmem %s260_s20, 128  ;;  %s849_s8 = smov [#allocation2]  }
  0x18   : > { %p753_p5 = scmp.ne.s32.totalorder %s260_s20, %s752_s30  ;;  %s757_s15 = sshll.u32 %s849_s8, 4  ;;  %s758_s15 = int_to_ptr.vmem [resolvable:$false] %s757_s15 }
  0x19   : > { %s759_s14 = scalar_lea.vmem %s758_s15, 256  ;;  %p760_p10 = scmp.lt.s32.totalorder %s260_s20, %s758_s15 }
  0x1a   : > { %p755_p6 = pnand %p753_p5, %p741_p3  ;;  %p761_p12 = scmp.lt.s32.totalorder %s759_s14, %s752_s30 }
  0x1c   : > { %p756_p7 = pneg %p755_p6  ;;  %p762_p4 = por %p761_p12, %p760_p10 }
  0x1e   : > { %p763_p13 = pnand %p762_p4, %p756_p7 }
  0x20   : > { %766 = shalt.err (!%p763_p13)
}
  0x21   : > { %675 = dma.hbm_to_vmem [thread:$0]  (!%p959_p0), %s257_s18, 128, %s260_s20, %s246_s28  }
  0x22   : > { %p265_p11 = pnand %p651_p1, %p264_p2 }
  0x23   : > { %s974_s7 = sand.u32 (!%p265_p11), 1, %s831_s22  }
  0x24   : > { %268 = sbr.rel (%p265_p11) target bundleno = 494 (0x1ee), region = 44  ;;  %s652_s13 = sshll.u32 (!%p265_p11), %s974_s7, 3 }
  0x25   : > { %s271_s16 = scalar_lea.sflag (!%p265_p11), [#allocation3], %s974_s7  ;;  %s980_s17 = scalar_lea.vmem (!%p265_p11), [#allocation2], %s652_s13 }
  0x29   : > { %818 = dma.done.wait (%p935_p8), %s271_s16, 128  }
  0x2a   : > { %820 = vsyncadd (%p935_p8), %s271_s16, 4294967168  ;;  %p313_p11 = scmp.lt.s32.totalorder %s839_s24, 1  ;;  %v850_v0 = vmov 0.0   ;;  %v851_v1 = vmov 0   ;;  %vm338_vm0 = vcmask 1043456   ;;  %v326_v3 = vld [vmem:[%s1049_s3] sm:$0xff] }
  0x2b   : > { %407 = vmatprep.mubr.f32.mxu0 %v850_v0  ;;  %732 = vset.pattern.permute.xlu0 %v851_v1  ;;  %v324_v5 = vld [vmem:[%s1048_s2] sm:$0xff]  ;;  %vm334_vm1 = vcmask 31744   ;;  %vm439_vm2 = vcmask 64512   ;;  %s667_s20 = sshll.u32 %s839_s24, 7  ;;  %s311_s27 = scalar_lea.vmem [#allocation5], %s652_s13 }
  0x2c   : > { %s314_s18 = scalar_select %p313_p11, %s839_s24, 1  ;;  %507 = vmatprep.mubr.f32.mxu1 %v850_v0  ;;  %329 = vperm.xlu0 %732, %v326_v3   ;;  %v433_v6 = vld [vmem:[%s1051_s5] sm:$0xf] }
  0x2d   : > { %v432_v30 = vld [vmem:[%s1050_s4] sm:$0xf]  ;;  %s540_s9 = scalar_lea.hbm %s1052_s6, %s667_s20  ;;  %s852_s14 = smov [#allocation5]  }
  0x2e   : > { %s666_s19 = sshll.u32 %s314_s18, 3  ;;  %v514_v31 = vld [vmem:[%s980_s17] sm:$0xff]  ;;  %s526_s17 = scalar_lea.sflag [#allocation4], %s974_s7 }
  0x2f   : > { %s320_s28 = scalar_lea.vmem %s1046_s0, %s666_s19  ;;  %v516_v35 = vcombine.high %v514_v31, %v514_v31  ;;  %s771_s24 = sshll.u32 %s852_s14, 4  ;;  %s772_s24 = int_to_ptr.vmem [resolvable:$false] %s771_s24 }
  0x30   : > { %v325_v2 = vld [vmem:[%s320_s28] sm:$0xff]  ;;  %436 = vperm.xlu0 %732, %v433_v6   ;;  %s542_s28 = sshll.u32 %s311_s27, 4  ;;  %s773_s13 = scalar_lea.vmem %s772_s24, 256  ;;  %s543_s28 = int_to_ptr.vmem [resolvable:$true] %s542_s28 }
  0x31   : > { %v333_v4 = vcombine.high %v325_v2, %v325_v2  ;;  %s767_s15 = scalar_lea.vmem %s543_s28, 128  ;;  %p774_p1 = scmp.lt.s32.totalorder %s543_s28, %s772_s24 }
  0x32   : > { %p768_p8 = scmp.ne.s32.totalorder %s543_s28, %s767_s15  ;;  %p775_p2 = scmp.lt.s32.totalorder %s773_s13, %s767_s15 }
  0x33   : > { %656 = vmatprep.subr.msk.mxu0 %vm338_vm0, %v333_v4 }
  0x34   : > { %657 = vmatpush1.msk.msra.mxu0 %vm338_vm0, %v325_v2  ;;  %p769_p12 = pnand %p768_p8, %p939_p9  ;;  %p776_p3 = por %p775_p2, %p774_p1 }
  0x35   : > { %658 = vmatmul.mubr.msk.f32.vlgmr.msra.gmra.mxu0 %vm334_vm1, %v324_v5 }
  0x36   : > { %p770_p0 = pneg %p769_p12 }
  0x38   : > { %p777_p5 = pnand %p776_p3, %p770_p0 }
  0xa7   : > { %v330_v7 = vpop.permute.xlu0 %329 }
  0xab   : > { %v437_v32 = vpop.permute.xlu0 %436 }
  0xf5   : > { %v409_v8 = vpop.f32.mrf.mxu0 }
  0xf6   : > { %v410_v9 = vadd.f32 %v409_v8, %v330_v7 }
  0xf7   : > { %v411_v10 = vpop.f32.mrf.mxu0 }
  0xf8   : > { %v416_v11 = vmul.f32 0.044715, %v410_v9  ;;  %v412_v12 = vadd.f32 %v411_v10, %v330_v7  ;;  %v414_v27 = vmul.f32 0.5, %v410_v9 }
  0xfa   : > { %v417_v13 = vmul.f32 0.044715, %v412_v12  ;;  %v418_v14 = vmul.f32 %v416_v11, %v410_v9  ;;  %v415_v25 = vmul.f32 0.5, %v412_v12 }
  0xfc   : > { %v419_v15 = vmul.f32 %v417_v13, %v412_v12  ;;  %v420_v16 = vmul.f32 %v418_v14, %v410_v9 }
  0xfe   : > { %v421_v17 = vmul.f32 %v419_v15, %v412_v12  ;;  %v422_v18 = vadd.f32 %v420_v16, %v410_v9 }
 0x100   : > { %v423_v19 = vadd.f32 %v421_v17, %v412_v12  ;;  %v424_v20 = vmul.f32 0.7978846, %v422_v18 }
 0x102   : > { %v425_v21 = vmul.f32 0.7978846, %v423_v19  ;;  %735 = vtanh.f32 %v424_v20 }
 0x104   : > { %737 = vtanh.f32 %v425_v21 }
 0x10f   : > { %v736_v22 = vpop.eup %735 }
 0x110   : > { %v428_v24 = vadd.f32 1.0, %v736_v22 }
 0x111   : > { %v738_v23 = vpop.eup %737 }
 0x112   : > { %v429_v26 = vadd.f32 1.0, %v738_v23  ;;  %v430_v29 = vmul.f32 %v428_v24, %v414_v27 }
 0x114   : > { %v431_v28 = vmul.f32 %v429_v26, %v415_v25 }
 0x116   : > { %473 = vmatprep.subr.mxu1 %v431_v28 }
 0x117   : > { %474 = vmatpush1.msra.mxu1 %v430_v29 }
 0x118   : > { %659 = vmatmul.mubr.msk.f32.vlgmr.msra.gmra.mxu1 %vm439_vm2, %v432_v30 }
 0x1d8   : > { %v509_v33 = vpop.f32.mrf.mxu1 }
 0x1d9   : > { %v510_v34 = vadd.f32 %v509_v33, %v437_v32 }
 0x1da   : > { %v511_v36 = vpop.f32.mrf.mxu1 }
 0x1db   : > { %v512_v37 = vadd.f32 %v511_v36, %v437_v32  ;;  %v518_v38 = vadd.f32 %v514_v31, %v510_v34 }
 0x1dd   : > { %v519_v39 = vadd.f32 %v516_v35, %v512_v37 }
 0x1df   : > { %v522_v40 = vcombine.low %v518_v38, %v519_v39 }
 0x1e1   : > { %524 = vst [vmem:[%s311_s27] sm:$0xff] %v522_v40 }
 0x1e2   : > { %780 = shalt.err (!%p777_p5)
}
 0x1e3   : > { %s781_s16 = scalar_lea.hbm %s540_s9, 128  ;;  %s785_s19 = scalar_lea.hbm %s1052_s6, 256 }
 0x1e4   : > { %p782_p6 = scmp.ne.s32.totalorder %s540_s9, %s781_s16  ;;  %p786_p4 = scmp.lt.s32.totalorder %s540_s9, %s1052_s6 }
 0x1e5   : > { %p787_p13 = scmp.lt.s32.totalorder %s785_s19, %s781_s16 }
 0x1e6   : > { %p783_p7 = pnand %p782_p6, %p939_p9 }
 0x1e7   : > { %p788_p11 = por %p787_p13, %p786_p4 }
 0x1e8   : > { %p784_p10 = pneg %p783_p7 }
 0x1ea   : > { %p789_p8 = pnand %p788_p11, %p784_p10 }
 0x1ec   : > { %792 = shalt.err (!%p789_p8)
}
 0x1ed   : > { %670 = dma.vmem_to_hbm [thread:$0]  (%p939_p9), %s543_s28, 128, %s540_s9, %s526_s17  }
 0x1ee PF: > { %s554_s30 = sand.u32 1, %s827_s21   ;;  %p1058_p12 = scmp.ne.s32.totalorder %s1056_s12, 0 }
 0x1ef   : > { %p1059_p0 = scmp.ge.s32.totalorder %s847_s26, 2  ;;  %s555_s8 = scalar_lea.sflag [#allocation4], %s554_s30 }
 0x1f1   : > { %p677_p1 = pnand %p1059_p0, %p1058_p12 }
 0x1f3   : > { %p678_p2 = pneg %p677_p1 }
 0x1f5   : > { %822 = dma.done.wait (%p678_p2), %s555_s8, 128  }
 0x1f6   : > { %824 = vsyncadd (%p678_p2), %s555_s8, 4294967168  ;;  %s22_s26 = sadd.s32 1, %s847_s26   ;;  %s1060_s21 = smov %s831_s22 }
 0x1f7   : > { %p19_p3 = scmp.ge.s32.totalorder %s22_s26, 4   ;;  %s1061_s22 = smov %s835_s23 }
 0x1f8   : > { %s1062_s23 = smov %s944_s11  ;;  %s1063_s24 = smov %s843_s25 }
 0x1f9   : > { %s1064_s25 = smov %s1066_s29  ;;  %21 = sbr.rel (!%p19_p3) target bundleno = 6 (0x6), region = 92 }
 0x1fe   :  { %560 = vsyncpa [#allocation3], 1 }
 0x1ff   :  { %562 = vsyncpa [#allocation3 + $0x1], 1 }
 0x200   :  { %563 = vsyncpa [#allocation4], 1 }
 0x201   :  { %565 = vsyncpa [#allocation4 + $0x1], 1 }

</bundles_post_ra>
